<compile_context>
chip_gen: v7x
topology: tpu7x:2x2x1
jax: 0.10.0
libtpu: 0.0.40
codegen_flags: <defaults>
</compile_context>

<pallas_src>
import jax
import jax.numpy as jnp
from jax.experimental import pallas as pl
from jax.experimental.pallas import tpu as pltpu


def _swish_kernel(x_ref, o_ref):
    x = x_ref[...]
    # Upcast to f32 so the transcendental runs at full precision even for
    # bf16 / fp8 inputs (v5e has no bf16 EUP path). exp lands on the EUP
    # slot; the divide is exact f32 — the kernel is DMA-bound, so neither
    # costs anything, and exact math keeps bitwise-tight accuracy.
    xf = x.astype(jnp.float32)
    sig = 1.0 / (1.0 + jnp.exp(-xf))
    o_ref[...] = (xf * sig).astype(o_ref.dtype)


def swish(x: jax.Array, *, tile_rows: int = 2048) -> jax.Array:
    """Elementwise x * sigmoid(x) computed in a Pallas TPU kernel.

    Floating-point inputs only. Internally flattens to a (rows, 128) slab;
    pads (and crops) only when the element count is not a multiple of the
    minimal (sublane*128) alignment, so aligned inputs are a free reshape.
    """
    orig_shape = x.shape
    dtype = x.dtype

    LANES = 128
    itemsize = jnp.dtype(dtype).itemsize
    # Dtype-aware sublane floor: sub-32-bit dtypes pack 2x/4x along sublanes.
    sub_floor = {4: 8, 2: 16, 1: 32}.get(itemsize, 8)

    n = x.size
    pad_unit = sub_floor * LANES
    n_padded = pl.cdiv(n, pad_unit) * pad_unit

    x_flat = jnp.ravel(x)
    if n_padded != n:
        # Minimal alignment pad only (one pad_unit max); cropped afterwards.
        x_flat = jnp.pad(x_flat, (0, n_padded - n))
    n_rows = n_padded // LANES

    # Block sizing: default 2048 rows x 128 lanes x 4 B = 1 MiB f32 blocks,
    # which hits ~86% of HBM roofline while keeping double-buffered in+out
    # (~4 MiB live) far under v5e's 16 MiB scoped-VMEM default and v7x's
    # 32 MiB (of 64 MiB physical). If one block would cover the whole array,
    # shrink it so the grid has >= 2 parallel steps and v7x's two
    # TensorCores can both stream their half of the data.
    tile_rows = max(sub_floor, (tile_rows // sub_floor) * sub_floor)
    if n_rows <= tile_rows and n_rows >= 2 * sub_floor:
        tile_rows = pl.cdiv(pl.cdiv(n_rows, 2), sub_floor) * sub_floor
    tile_rows = min(tile_rows, n_rows)

    grid = (pl.cdiv(n_rows, tile_rows),)

    out2d = pl.pallas_call(
        _swish_kernel,
        out_shape=jax.ShapeDtypeStruct((n_rows, LANES), dtype),
        grid_spec=pl.GridSpec(
            grid=grid,
            in_specs=[pl.BlockSpec((tile_rows, LANES), lambda i: (i, 0))],
            out_specs=pl.BlockSpec((tile_rows, LANES), lambda i: (i, 0)),
        ),
        compiler_params=pltpu.CompilerParams(
            dimension_semantics=("parallel",),
        ),
    )(x_flat.reshape(n_rows, LANES))

    out = out2d.reshape(-1)
    if n_padded != n:
        out = out[:n]
    return out.reshape(orig_shape)


if __name__ == "__main__":
    key = jax.random.PRNGKey(0)

    # Small NCHW input consistent with the (elementwise) forward pass.
    # 2*4*16*16 = 2048 elements -> already aligned, no pad/crop, grid of 2.
    x = jax.random.normal(key, (2, 4, 16, 16), dtype=jnp.float32)
    y = jax.block_until_ready(swish(x))
    y_ref = x * jax.nn.sigmoid(x)
    assert y.shape == x.shape and y.dtype == x.dtype
    assert jnp.allclose(y, y_ref, atol=1e-6, rtol=1e-5)

    # Misaligned bf16 input: exercises the pad/crop path and the f32 upcast.
    k2 = jax.random.PRNGKey(1)
    xb = jax.random.normal(k2, (3, 5, 7), dtype=jnp.bfloat16)
    yb = jax.block_until_ready(swish(xb))
    xb_f32 = xb.astype(jnp.float32)
    yb_ref = xb_f32 * jax.nn.sigmoid(xb_f32)
    assert yb.shape == xb.shape and yb.dtype == xb.dtype
    assert jnp.allclose(yb.astype(jnp.float32), yb_ref, atol=3e-2, rtol=2e-2)

    print("KERNEL_OK")
</pallas_src>

<mosaic_0001>
module attributes {stable_mosaic.version = 11 : i64} {
  func.func @_swish_kernel(%arg0: i32, %arg1: memref<8x128xf32, #tpu.memory_space<vmem>>, %arg2: memref<8x128xf32, #tpu.memory_space<vmem>>) attributes {dimension_semantics = [#tpu.dimension_semantics<parallel>], iteration_bounds = array<i64: 2>, scalar_prefetch = 0 : i64, scratch_operands = 0 : i64, tpu.core_type = #tpu.core_type<tc>, window_params = [{transform_indices = @transform_0, window_bounds = array<i64: 8, 128>}, {transform_indices = @transform_1, window_bounds = array<i64: 8, 128>}]} {
    %c0 = arith.constant 0 : index
    %c0_0 = arith.constant 0 : index
    %0 = vector.load %arg1[%c0, %c0_0] : memref<8x128xf32, #tpu.memory_space<vmem>>, vector<8x128xf32>
    %cst = arith.constant 0.000000e+00 : f32
    %1 = vector.broadcast %cst : f32 to vector<8x128xf32>
    %2 = arith.subf %1, %0 : vector<8x128xf32>
    %3 = math.exp %2 : vector<8x128xf32>
    %cst_1 = arith.constant 1.000000e+00 : f32
    %4 = vector.broadcast %cst_1 : f32 to vector<8x128xf32>
    %5 = arith.addf %4, %3 : vector<8x128xf32>
    %cst_2 = arith.constant 1.000000e+00 : f32
    %6 = vector.broadcast %cst_2 : f32 to vector<8x128xf32>
    %7 = arith.divf %6, %5 : vector<8x128xf32>
    %8 = arith.mulf %0, %7 : vector<8x128xf32>
    %c0_3 = arith.constant 0 : index
    %c0_4 = arith.constant 0 : index
    %9 = vector.load %arg2[%c0_3, %c0_4] : memref<8x128xf32, #tpu.memory_space<vmem>>, vector<8x128xf32>
    tpu.vector_store %arg2[%c0_3, %c0_4], %8 {strides = array<i32>} : memref<8x128xf32, #tpu.memory_space<vmem>>, vector<8x128xf32>,
    return
  }
  func.func @transform_0(%arg0: i32) -> (i32, i32) {
    %c0_i32 = arith.constant 0 : i32
    %c0_i32_0 = arith.constant 0 : i32
    return %arg0, %c0_i32 : i32, i32
  }
  func.func @transform_1(%arg0: i32) -> (i32, i32) {
    %c0_i32 = arith.constant 0 : i32
    %c0_i32_0 = arith.constant 0 : i32
    return %arg0, %c0_i32 : i32, i32
  }
}

</mosaic_0001>

<bundles_post_ra>
// kernel: tpu_custom_call.1
= control target key start
LH: loop header
LB: loop body
LE: loop exit
PB: predicated region body
PF: predicated region fallthrough
CT: control target
= control target key end

     0   :  { %6 = vsyncpa [#allocation3], 0  ;;  %s558_s0 = inlined_call_operand.hbm [shape: f32[16,128], index: 0, kind: input, shape index: {}]   ;;  %s559_s1 = inlined_call_operand.hbm [shape: f32[16,128], index: 1, kind: output, shape index: {}]  }
   0x1   :  { %8 = vsyncpa [#allocation3 + $0x1], 0 }
   0x2   :  { %9 = vsyncpa [#allocation4], 0 }
   0x3   :  { %11 = vsyncpa [#allocation4 + $0x1], 0  ;;  %s397_s6 = smov 0   ;;  %s399_s7 = smov 0  }
   0x4   :  { %s401_s8 = smov 0   ;;  %s403_s9 = smov 0  }
   0x5 LB: > { %s418_s10 = sadd.s32 4294967295, %s383_s9   ;;  %s225_s11 = sadd.s32 4294967294, %s383_s9   ;;  %s383_s9 = sphi %s403_s9, %s574_s9   ;;  %s379_s8 = sphi %s401_s8, %s573_s8   ;;  %s375_s7 = sphi %s399_s7, %s572_s7   ;;  %s371_s6 = sphi %s397_s6, %s571_s6  }
   0x6   : > { %s422_s12 = sadd.s32 1, %s383_s9   ;;  %s24_s13 = sadd.s32 1, %s379_s8 }
   0x7   : > { %s21_s14 = ssub.s32 %s383_s9, %s422_s12  ;;  %p31_p0 = scmp.ne.s32.totalorder %s379_s8, %s375_s7 }
   0x8   : > { %p22_p1 = scmp.eq.s32.totalorder %s21_s14, 0  ;;  %p32_p2 = scmp.eq.s32.totalorder %s383_s9, 0 }
   0x9   : > { %p37_p3 = scmp.ne.s32.totalorder %s375_s7, %s371_s6  ;;  %p38_p4 = scmp.eq.s32.totalorder %s418_s10, 0 }
   0xa   : > { %s434_s15 = scalar_select %p22_p1, %s379_s8, %s24_s13  }
   0xb   : > { %p436_p5 = por %p32_p2, %p31_p0  ;;  %p440_p6 = por %p38_p4, %p37_p3 }
   0xc   : > { %p61_p7 = scmp.eq.s32.totalorder %s418_s10, 1  ;;  %p67_p8 = scmp.eq.s32.totalorder %s225_s11, 1 }
   0xd   : > { %p249_p10 = scmp.lt.s32.totalorder %s383_s9, 2  ;;  %s87_s20 = sand.u32 1, %s379_s8  }
   0xe   : > { %p447_p11 = por %p61_p7, %p31_p0  ;;  %p451_p12 = por %p67_p8, %p37_p3 }
   0xf   : > { %s229_s21 = sshll.u32 %s383_s9, 7  ;;  %s228_s22 = sshll.u32 %s87_s20, 3 }
  0x10   : > { %s563_s18 = scalar_select %p447_p11, 1, 0 }
  0x11   : > { %s564_s19 = scalar_select %p451_p12, 1, 0 }
  0x12   : > { %s460_s25 = scalar_lea.hbm %s558_s0, %s229_s21  ;;  %s91_s26 = scalar_lea.vmem [#allocation2], %s228_s22 }
  0x13   : > { %s98_s27 = sshll.u32 %s91_s26, 4  ;;  %p464_p13 = pnand %p249_p10, %p436_p5  ;;  %s468_s27 = int_to_ptr.vmem [resolvable:$true] %s98_s27 }
  0x14   : > { %s88_s29 = scalar_lea.sflag [#allocation3], %s87_s20  ;;  %s287_s30 = scalar_lea.hbm %s460_s25, 128 }
  0x15   : > { %p288_p2 = scmp.ne.s32.totalorder %s460_s25, %s287_s30  ;;  %p289_p3 = pneg %p464_p13 }
  0x16   : > { %s292_s4 = scalar_lea.hbm %s558_s0, 256  ;;  %p293_p5 = scmp.lt.u32.totalorder %s460_s25, %s558_s0 }
  0x17   : > { %p290_p4 = pnand %p289_p3, %p288_p2  ;;  %p294_p8 = scmp.lt.u32.totalorder %s292_s4, %s287_s30 }
  0x18   : > { %p296_p9 = scmp.lt.u32.totalorder %s287_s30, %s460_s25 }
  0x19   : > { %p291_p7 = pneg %p290_p4  ;;  %p295_p10 = por %p294_p8, %p293_p5 }
  0x1b   : > { %p297_p0 = por %p296_p9, %p295_p10 }
  0x1d   : > { %p298_p1 = pnand %p297_p0, %p291_p7 }
  0x1f   : > { %301 = shalt.err (!%p298_p1)
}
  0x20   : > { %s302_s13 = scalar_lea.vmem %s468_s27, 128  ;;  %s385_s14 = smov [#allocation2]  }
  0x21   : > { %p303_p2 = scmp.ne.s32.totalorder %s468_s27, %s302_s13  ;;  %s307_s16 = sshll.u32 %s385_s14, 4  ;;  %s308_s16 = int_to_ptr.vmem [resolvable:$false] %s307_s16 }
  0x22   : > { %s309_s20 = scalar_lea.vmem %s308_s16, 256  ;;  %p310_p11 = scmp.lt.s32.totalorder %s468_s27, %s308_s16 }
  0x23   : > { %p305_p4 = pnand %p303_p2, %p289_p3  ;;  %p311_p5 = scmp.lt.s32.totalorder %s309_s20, %s302_s13 }
  0x25   : > { %p306_p12 = pneg %p305_p4  ;;  %p312_p8 = por %p311_p5, %p310_p11 }
  0x27   : > { %p313_p9 = pnand %p312_p8, %p306_p12 }
  0x29   : > { %316 = shalt.err (!%p313_p9)
}
  0x2a   : > { %244 = dma.hbm_to_vmem [thread:$0]  (!%p464_p13), %s460_s25, 128, %s468_s27, %s88_s29  }
  0x2b   : > { %p566_p0 = scmp.lt.s32.totalorder %s383_s9, 3  ;;  %p567_p1 = scmp.ge.s32.totalorder %s383_s9, 1 }
  0x2d   : > { %p104_p3 = pnand %p567_p1, %p566_p0 }
  0x2e   : > { %s502_s21 = sand.u32 (!%p104_p3), 1, %s375_s7  }
  0x2f   : > { %107 = sbr.rel (%p104_p3) target bundleno = 100 (0x64), region = 24  ;;  %s231_s22 = sshll.u32 (!%p104_p3), %s502_s21, 3 }
  0x30   : > { %s110_s23 = scalar_lea.sflag (!%p104_p3), [#allocation3], %s502_s21  ;;  %s113_s24 = scalar_lea.vmem (!%p104_p3), [#allocation2], %s231_s22 }
  0x36   : > { %362 = dma.done.wait (%p440_p6), %s110_s23, 128  }
  0x37   : > { %364 = vsyncadd (%p440_p6), %s110_s23, 4294967168  ;;  %v132_v0 = vld [vmem:[%s113_s24] sm:$0xff]  ;;  %s131_s25 = scalar_lea.vmem [#allocation5], %s231_s22  ;;  %s234_s27 = sshll.u32 %s418_s10, 7 }
  0x38   : > { %v133_v1 = vsub.f32 0.0, %v132_v0  ;;  %s155_s26 = sshll.u32 %s131_s25, 4  ;;  %s516_s29 = scalar_lea.hbm %s559_s1, %s234_s27  ;;  %s511_s26 = int_to_ptr.vmem [resolvable:$true] %s155_s26 }
  0x39   : > { %s142_s30 = scalar_lea.sflag [#allocation4], %s502_s21  ;;  %s317_s2 = scalar_lea.vmem %s511_s26, 128 }
  0x3a   : > { %v134_v2 = vmul.f32 1.442695, %v133_v1  ;;  %p318_p6 = scmp.ne.s32.totalorder %s511_s26, %s317_s2  ;;  %p568_p11 = scmp.ne.s32.totalorder %s563_s18, 0 }
  0x3b   : > { %s386_s10 = smov [#allocation5]  }
  0x3c   : > { %283 = vpow2.f32 %v134_v2  ;;  %p319_p12 = pnand %p318_p6, %p568_p11  ;;  %s321_s3 = sshll.u32 %s386_s10, 4  ;;  %s322_s3 = int_to_ptr.vmem [resolvable:$false] %s321_s3 }
  0x3d   : > { %s323_s4 = scalar_lea.vmem %s322_s3, 256  ;;  %p324_p7 = scmp.lt.s32.totalorder %s511_s26, %s322_s3 }
  0x3e   : > { %p320_p13 = pneg %p319_p12  ;;  %p325_p10 = scmp.lt.s32.totalorder %s323_s4, %s317_s2 }
  0x40   : > { %p326_p2 = por %p325_p10, %p324_p7 }
  0x42   : > { %p327_p4 = pnand %p326_p2, %p320_p13 }
  0x46   : > { %v284_v3 = vpop.eup %283 }
  0x47   : > { %v136_v4 = vadd.f32 1.0, %v284_v3 }
  0x49   : > { %285 = vrcp.f32 %v136_v4 }
  0x53   : > { %v286_v5 = vpop.eup %285 }
  0x54   : > { %v139_v6 = vmul.f32 %v286_v5, %v132_v0 }
  0x56   : > { %140 = vst [vmem:[%s131_s25] sm:$0xff] %v139_v6 }
  0x57   : > { %330 = shalt.err (!%p327_p4)
}
  0x58   : > { %s331_s5 = scalar_lea.hbm %s516_s29, 128  ;;  %s335_s14 = scalar_lea.hbm %s559_s1, 256 }
  0x59   : > { %p332_p5 = scmp.ne.s32.totalorder %s516_s29, %s331_s5  ;;  %p336_p0 = scmp.lt.u32.totalorder %s516_s29, %s559_s1 }
  0x5a   : > { %p337_p1 = scmp.lt.u32.totalorder %s335_s14, %s331_s5  ;;  %p339_p6 = scmp.lt.u32.totalorder %s331_s5, %s516_s29 }
  0x5b   : > { %p333_p8 = pnand %p332_p5, %p568_p11 }
  0x5c   : > { %p338_p3 = por %p337_p1, %p336_p0 }
  0x5d   : > { %p334_p9 = pneg %p333_p8 }
  0x5e   : > { %p340_p12 = por %p339_p6, %p338_p3 }
  0x60   : > { %p341_p13 = pnand %p340_p12, %p334_p9 }
  0x62   : > { %344 = shalt.err (!%p341_p13)
}
  0x63   : > { %239 = dma.vmem_to_hbm [thread:$0]  (%p568_p11), %s511_s26, 128, %s516_s29, %s142_s30  }
  0x64 PF: > { %s167_s21 = sand.u32 1, %s371_s6   ;;  %p569_p7 = scmp.ne.s32.totalorder %s564_s19, 0 }
  0x65   : > { %p570_p10 = scmp.ge.s32.totalorder %s383_s9, 2  ;;  %s168_s22 = scalar_lea.sflag [#allocation4], %s167_s21 }
  0x67   : > { %p246_p2 = pnand %p570_p10, %p569_p7 }
  0x69   : > { %366 = dma.done.wait (!%p246_p2), %s168_s22, 128  }
  0x6a   : > { %368 = vsyncadd (!%p246_p2), %s168_s22, 4294967168  ;;  %p14_p4 = scmp.ge.s32.totalorder %s422_s12, 4   ;;  %s571_s6 = smov %s375_s7 }
  0x6b   : > { %s572_s7 = smov %s379_s8  ;;  %s573_s8 = smov %s434_s15 }
  0x6c   : > { %s574_s9 = smov %s422_s12  ;;  %16 = sbr.rel (!%p14_p4) target bundleno = 5 (0x5), region = 69 }
  0x73   :  { %173 = vsyncpa [#allocation3], 1 }
  0x74   :  { %175 = vsyncpa [#allocation3 + $0x1], 1 }
  0x75   :  { %176 = vsyncpa [#allocation4], 1 }
  0x76   :  { %178 = vsyncpa [#allocation4 + $0x1], 1 }

</bundles_post_ra>
